<compile_context>
chip_gen: v7x
topology: tpu7x:2x2x1
jax: 0.10.0
libtpu: 0.0.40
codegen_flags: <defaults>
</compile_context>

<pallas_src>
import functools
import math

import jax
import jax.numpy as jnp
from jax.experimental import pallas as pl
from jax.experimental.pallas import tpu as pltpu


def _mha_kernel(x_ref, wqkv_ref, bqkv_ref, o_ref, *, num_heads: int,
                use_bf16_matmul: bool):
    """Single-step kernel.

    x_ref    : (nb, S, E)  input tokens
    wqkv_ref : (E, 3E)     pre-transposed fused [Wq.T*scale | Wk.T | Wv.T]
    bqkv_ref : (1, 3E)     fused [bq*scale | bk | bv]
    o_ref    : (nb, S, E)  attention output
    """
    nb, S, E = x_ref.shape
    H = num_heads
    D = E // H
    mm_dtype = jnp.bfloat16 if use_bf16_matmul else jnp.float32

    # Fused QKV projection for all tokens: one MXU matmul, one bias add.
    # (The 1/sqrt(embed_dim) softmax scale is already folded into Wq/bq.)
    x = x_ref[...].reshape(nb * S, E).astype(mm_dtype)
    qkv = jnp.dot(x, wqkv_ref[...].astype(mm_dtype),
                  preferred_element_type=jnp.float32) + bqkv_ref[...]

    q = qkv[:, :E].reshape(nb, S, E)          # scale already applied via Wq/bq
    k = qkv[:, E:2 * E].reshape(nb, S, E)
    v = qkv[:, 2 * E:].reshape(nb, S, E)

    # Fold heads into the leading batch axis: (nb, S, E) -> (H*nb, S, D) with
    # x-index = h*nb + b.  Static lane slices + leading-axis concat only (no
    # generic 4-D transpose, which Mosaic does not reliably lower for
    # non-minor permutations).
    def fold_heads(t):
        return jnp.concatenate(
            [t[:, :, h * D:(h + 1) * D] for h in range(H)], axis=0)

    qf = fold_heads(q).astype(mm_dtype)
    kf = fold_heads(k).astype(mm_dtype)
    vf = fold_heads(v).astype(mm_dtype)

    # ONE batched einsum pair covers every (batch, head) pair.
    s = jnp.einsum("xqd,xkd->xqk", qf, kf,
                   preferred_element_type=jnp.float32)           # (H*nb, S, S)
    s = s - jnp.max(s, axis=-1, keepdims=True)                   # f32 softmax
    p = jnp.exp(s)
    p = p * pl.reciprocal(jnp.sum(p, axis=-1, keepdims=True), approx=False)

    of = jnp.einsum("xqk,xkd->xqd", p.astype(mm_dtype), vf,
                    preferred_element_type=jnp.float32)          # (H*nb, S, D)

    # Unfold heads back into lanes (leading-axis slices + one lane concat) and
    # write the whole block with a single store.
    out = jnp.concatenate([of[h * nb:(h + 1) * nb] for h in range(H)], axis=-1)
    o_ref[...] = out.astype(o_ref.dtype)


def multi_head_attention(x, wq, bq, wk, bk, wv, bv, *, num_heads: int,
                         use_bf16_matmul: bool = False):
    """x: (B, S, E) float32; w*: (E, E) in PyTorch (out, in) layout; b*: (E,).

    Returns (B, S, E), matching MultiHeadAttention.forward.
    """
    B, S, E = x.shape
    assert E % num_heads == 0

    # Hoisted to XLA (constant-foldable w.r.t. the weights): pre-transpose,
    # fuse QKV, and fold the reference's 1/sqrt(embed_dim) score scale into
    # the query weight/bias.
    scale = 1.0 / math.sqrt(E)
    wqkv = jnp.concatenate([wq.T * scale, wk.T, wv.T], axis=1)       # (E, 3E)
    bqkv = jnp.concatenate([bq * scale, bk, bv]).reshape(1, 3 * E)   # (1, 3E)

    kernel = functools.partial(_mha_kernel, num_heads=num_heads,
                               use_bf16_matmul=use_bf16_matmul)

    # The whole problem fits comfortably in VMEM -> single un-gridded step on
    # every generation; all operands are whole-array VMEM resident (no
    # pipeline prologue, no double-buffered copies of constant blocks).
    vmem_spec = pl.BlockSpec(memory_space=pltpu.MemorySpace.VMEM)
    return pl.pallas_call(
        kernel,
        out_shape=jax.ShapeDtypeStruct((B, S, E), x.dtype),
        in_specs=[vmem_spec, vmem_spec, vmem_spec],
        out_specs=vmem_spec,
    )(x, wqkv, bqkv)


def _reference(x, wq, bq, wk, bk, wv, bv, num_heads):
    """Pure-JAX port of the PyTorch forward for verification."""
    B, S, E = x.shape
    D = E // num_heads
    q = (x @ wq.T + bq).reshape(B, S, num_heads, D).transpose(0, 2, 1, 3)
    k = (x @ wk.T + bk).reshape(B, S, num_heads, D).transpose(0, 2, 1, 3)
    v = (x @ wv.T + bv).reshape(B, S, num_heads, D).transpose(0, 2, 1, 3)
    scores = jax.nn.softmax(
        jnp.einsum("bhqd,bhkd->bhqk", q, k) / math.sqrt(E), axis=-1)
    out = jnp.einsum("bhqk,bhkd->bhqd", scores, v)
    return out.transpose(0, 2, 1, 3).reshape(B, S, E)


if __name__ == "__main__":
    # Config: image_embedding=32, attention_head=4; input (batch=2, seq=8, embed=32)
    B, S, E, H = 2, 8, 32, 4

    key = jax.random.PRNGKey(0)
    kx, kq, kbq, kk, kbk, kv, kbv = jax.random.split(key, 7)

    x = jax.random.normal(kx, (B, S, E), dtype=jnp.float32)
    bound = 1.0 / math.sqrt(E)  # nn.Linear default init range
    wq = jax.random.uniform(kq, (E, E), jnp.float32, -bound, bound)
    bq = jax.random.uniform(kbq, (E,), jnp.float32, -bound, bound)
    wk = jax.random.uniform(kk, (E, E), jnp.float32, -bound, bound)
    bk = jax.random.uniform(kbk, (E,), jnp.float32, -bound, bound)
    wv = jax.random.uniform(kv, (E, E), jnp.float32, -bound, bound)
    bv = jax.random.uniform(kbv, (E,), jnp.float32, -bound, bound)

    out = multi_head_attention(x, wq, bq, wk, bk, wv, bv, num_heads=H)
    out = jax.block_until_ready(out)

    ref = _reference(x, wq, bq, wk, bk, wv, bv, H)
    assert out.shape == (B, S, E)
    assert jnp.allclose(out, ref, atol=1e-5, rtol=1e-5), "mismatch vs pure-JAX reference"

    print("KERNEL_OK")
</pallas_src>

<mosaic_0001>
module attributes {stable_mosaic.version = 11 : i64} {
  func.func @_mha_kernel(%arg0: memref<2x8x32xf32, #tpu.memory_space<vmem>>, %arg1: memref<32x96xf32, #tpu.memory_space<vmem>>, %arg2: memref<1x96xf32, #tpu.memory_space<vmem>>, %arg3: memref<2x8x32xf32, #tpu.memory_space<vmem>>) attributes {dimension_semantics = [], scalar_prefetch = 0 : i64, scratch_operands = 0 : i64, tpu.core_type = #tpu.core_type<tc>} {
    %c0 = arith.constant 0 : index
    %c0_0 = arith.constant 0 : index
    %c0_1 = arith.constant 0 : index
    %0 = vector.load %arg0[%c0, %c0_0, %c0_1] : memref<2x8x32xf32, #tpu.memory_space<vmem>>, vector<2x8x32xf32>
    %1 = vector.shape_cast %0 : vector<2x8x32xf32> to vector<16x32xf32>
    %c0_2 = arith.constant 0 : index
    %c0_3 = arith.constant 0 : index
    %2 = vector.load %arg1[%c0_2, %c0_3] : memref<32x96xf32, #tpu.memory_space<vmem>>, vector<32x96xf32>
    %cst = arith.constant dense<0.000000e+00> : vector<16x96xf32>
    %3 = tpu.matmul %1, %2, %cst {dimension_numbers = #tpu.dot_dimension_numbers<[1], [0], [0], [1], [0, 0, 1, 1], [], []>} : vector<16x32xf32>, vector<32x96xf32>, vector<16x96xf32> -> vector<16x96xf32>
    %c0_4 = arith.constant 0 : index
    %c0_5 = arith.constant 0 : index
    %4 = vector.load %arg2[%c0_4, %c0_5] : memref<1x96xf32, #tpu.memory_space<vmem>>, vector<1x96xf32>
    %5 = vector.broadcast %4 : vector<1x96xf32> to vector<16x96xf32>
    %6 = arith.addf %3, %5 : vector<16x96xf32>
    %7 = vector.extract_strided_slice %6 {offsets = [0, 0], sizes = [16, 32], strides = [1, 1]} : vector<16x96xf32> to vector<16x32xf32>
    %8 = vector.shape_cast %7 : vector<16x32xf32> to vector<2x8x32xf32>
    %9 = vector.extract_strided_slice %6 {offsets = [0, 32], sizes = [16, 32], strides = [1, 1]} : vector<16x96xf32> to vector<16x32xf32>
    %10 = vector.shape_cast %9 : vector<16x32xf32> to vector<2x8x32xf32>
    %11 = vector.extract_strided_slice %6 {offsets = [0, 64], sizes = [16, 32], strides = [1, 1]} : vector<16x96xf32> to vector<16x32xf32>
    %12 = vector.shape_cast %11 : vector<16x32xf32> to vector<2x8x32xf32>
    %13 = vector.extract_strided_slice %8 {offsets = [0, 0, 0], sizes = [2, 8, 8], strides = [1, 1, 1]} : vector<2x8x32xf32> to vector<2x8x8xf32>
    %14 = vector.extract_strided_slice %8 {offsets = [0, 0, 8], sizes = [2, 8, 8], strides = [1, 1, 1]} : vector<2x8x32xf32> to vector<2x8x8xf32>
    %15 = vector.extract_strided_slice %8 {offsets = [0, 0, 16], sizes = [2, 8, 8], strides = [1, 1, 1]} : vector<2x8x32xf32> to vector<2x8x8xf32>
    %16 = vector.extract_strided_slice %8 {offsets = [0, 0, 24], sizes = [2, 8, 8], strides = [1, 1, 1]} : vector<2x8x32xf32> to vector<2x8x8xf32>
    %17 = tpu.concatenate %13, %14, %15, %16 in 0 : vector<2x8x8xf32>, vector<2x8x8xf32>, vector<2x8x8xf32>, vector<2x8x8xf32> -> vector<8x8x8xf32>
    %18 = vector.extract_strided_slice %10 {offsets = [0, 0, 0], sizes = [2, 8, 8], strides = [1, 1, 1]} : vector<2x8x32xf32> to vector<2x8x8xf32>
    %19 = vector.extract_strided_slice %10 {offsets = [0, 0, 8], sizes = [2, 8, 8], strides = [1, 1, 1]} : vector<2x8x32xf32> to vector<2x8x8xf32>
    %20 = vector.extract_strided_slice %10 {offsets = [0, 0, 16], sizes = [2, 8, 8], strides = [1, 1, 1]} : vector<2x8x32xf32> to vector<2x8x8xf32>
    %21 = vector.extract_strided_slice %10 {offsets = [0, 0, 24], sizes = [2, 8, 8], strides = [1, 1, 1]} : vector<2x8x32xf32> to vector<2x8x8xf32>
    %22 = tpu.concatenate %18, %19, %20, %21 in 0 : vector<2x8x8xf32>, vector<2x8x8xf32>, vector<2x8x8xf32>, vector<2x8x8xf32> -> vector<8x8x8xf32>
    %23 = vector.extract_strided_slice %12 {offsets = [0, 0, 0], sizes = [2, 8, 8], strides = [1, 1, 1]} : vector<2x8x32xf32> to vector<2x8x8xf32>
    %24 = vector.extract_strided_slice %12 {offsets = [0, 0, 8], sizes = [2, 8, 8], strides = [1, 1, 1]} : vector<2x8x32xf32> to vector<2x8x8xf32>
    %25 = vector.extract_strided_slice %12 {offsets = [0, 0, 16], sizes = [2, 8, 8], strides = [1, 1, 1]} : vector<2x8x32xf32> to vector<2x8x8xf32>
    %26 = vector.extract_strided_slice %12 {offsets = [0, 0, 24], sizes = [2, 8, 8], strides = [1, 1, 1]} : vector<2x8x32xf32> to vector<2x8x8xf32>
    %27 = tpu.concatenate %23, %24, %25, %26 in 0 : vector<2x8x8xf32>, vector<2x8x8xf32>, vector<2x8x8xf32>, vector<2x8x8xf32> -> vector<8x8x8xf32>
    "tpu.trace_start"() <{level = 10 : i32, message = "xqd,xkd->xqk"}> : () -> ()
    %cst_6 = arith.constant dense<0.000000e+00> : vector<8x8x8xf32>
    %28 = tpu.matmul %17, %22, %cst_6 {dimension_numbers = #tpu.dot_dimension_numbers<[2], [2], [1], [1], [0, 0, 0, 1, 1, 1], [0], [0]>} : vector<8x8x8xf32>, vector<8x8x8xf32>, vector<8x8x8xf32> -> vector<8x8x8xf32>
    "tpu.trace_stop"() : () -> ()
    %cst_7 = arith.constant dense<0xFF800000> : vector<8x8xf32>
    %29 = vector.multi_reduction <maximumf>, %28, %cst_7 [2] : vector<8x8x8xf32> to vector<8x8xf32>
    %30 = vector.shape_cast %29 : vector<8x8xf32> to vector<8x8x1xf32>
    %31 = vector.broadcast %30 : vector<8x8x1xf32> to vector<8x8x8xf32>
    %32 = arith.subf %28, %31 : vector<8x8x8xf32>
    %33 = math.exp %32 : vector<8x8x8xf32>
    %cst_8 = arith.constant dense<0.000000e+00> : vector<8x8xf32>
    %34 = vector.multi_reduction <add>, %33, %cst_8 [2] : vector<8x8x8xf32> to vector<8x8xf32>
    %35 = vector.shape_cast %34 : vector<8x8xf32> to vector<8x8x1xf32>
    %36 = tpu.reciprocal %35 : vector<8x8x1xf32> -> vector<8x8x1xf32>
    %37 = vector.broadcast %36 : vector<8x8x1xf32> to vector<8x8x8xf32>
    %38 = arith.mulf %33, %37 : vector<8x8x8xf32>
    "tpu.trace_start"() <{level = 10 : i32, message = "xqk,xkd->xqd"}> : () -> ()
    %cst_9 = arith.constant dense<0.000000e+00> : vector<8x8x8xf32>
    %39 = tpu.matmul %38, %27, %cst_9 {dimension_numbers = #tpu.dot_dimension_numbers<[2], [1], [1], [2], [0, 0, 0, 1, 1, 2], [0], [0]>} : vector<8x8x8xf32>, vector<8x8x8xf32>, vector<8x8x8xf32> -> vector<8x8x8xf32>
    "tpu.trace_stop"() : () -> ()
    %40 = vector.extract_strided_slice %39 {offsets = [0, 0, 0], sizes = [2, 8, 8], strides = [1, 1, 1]} : vector<8x8x8xf32> to vector<2x8x8xf32>
    %41 = vector.extract_strided_slice %39 {offsets = [2, 0, 0], sizes = [2, 8, 8], strides = [1, 1, 1]} : vector<8x8x8xf32> to vector<2x8x8xf32>
    %42 = vector.extract_strided_slice %39 {offsets = [4, 0, 0], sizes = [2, 8, 8], strides = [1, 1, 1]} : vector<8x8x8xf32> to vector<2x8x8xf32>
    %43 = vector.extract_strided_slice %39 {offsets = [6, 0, 0], sizes = [2, 8, 8], strides = [1, 1, 1]} : vector<8x8x8xf32> to vector<2x8x8xf32>
    %44 = tpu.concatenate %40, %41, %42, %43 in 2 : vector<2x8x8xf32>, vector<2x8x8xf32>, vector<2x8x8xf32>, vector<2x8x8xf32> -> vector<2x8x32xf32>
    %c0_10 = arith.constant 0 : index
    %c0_11 = arith.constant 0 : index
    %c0_12 = arith.constant 0 : index
    %45 = vector.load %arg3[%c0_10, %c0_11, %c0_12] : memref<2x8x32xf32, #tpu.memory_space<vmem>>, vector<2x8x32xf32>
    tpu.vector_store %arg3[%c0_10, %c0_11, %c0_12], %44 {strides = array<i32>} : memref<2x8x32xf32, #tpu.memory_space<vmem>>, vector<2x8x32xf32>,
    return
  }
}

</mosaic_0001>

<bundles_post_ra>
// kernel: tpu_custom_call.1
= control target key start
LH: loop header
LB: loop body
LE: loop exit
PB: predicated region body
PF: predicated region fallthrough
CT: control target
= control target key end

     0   :  { %8 = vsyncpa [#allocation3], 0  ;;  %s2035_s0 = inlined_call_operand.hbm [shape: f32[2,8,32], index: 0, kind: input, shape index: {}]   ;;  %s2036_s1 = inlined_call_operand.hbm [shape: f32[32,96], index: 1, kind: input, shape index: {}]   ;;  %s2037_s2 = inlined_call_operand.vmem [shape: f32[1,96], index: 2, kind: input, shape index: {}]   ;;  %s2038_s3 = inlined_call_operand.hbm [shape: f32[2,8,32], index: 3, kind: output, shape index: {}]  }
   0x1   :  { %9 = vsyncpa [#allocation6], 0 }
   0x2   :  { %10 = vsyncpa [#allocation4], 0  ;;  %s1791_s12 = smov [#allocation2]   ;;  %s1719_s16 = scalar_lea.hbm %s2035_s0, 256 }
   0x3   :  { %s16_s13 = sshll.u32 %s1791_s12, 4  ;;  %p1720_p0 = scmp.ne.s32.totalorder %s2035_s0, %s1719_s16  ;;  %s17_s13 = int_to_ptr.vmem [resolvable:$true] %s16_s13 }
   0x4   :  { %p1723_p1 = scmp.lt.u32.totalorder %s1719_s16, %s2035_s0 }
   0x6   :  { %p1725_p2 = pnand %p1723_p1, %p1720_p0 }
   0x8   :  { %1728 = shalt.err (!%p1725_p2)
}
   0x9   :  { %s1729_s21 = scalar_lea.vmem %s17_s13, 256  ;;  %p1734_p4 = scmp.lt.s32.totalorder %s17_s13, %s17_s13 }
   0xa   :  { %p1730_p3 = scmp.ne.s32.totalorder %s17_s13, %s1729_s21  ;;  %p1735_p5 = scmp.lt.s32.totalorder %s1729_s21, %s1729_s21 }
   0xc   :  { %p1736_p6 = por %p1735_p5, %p1734_p4 }
   0xe   :  { %p1737_p7 = pnand %p1736_p6, %p1730_p3 }
  0x10   :  { %1740 = shalt.err (!%p1737_p7)
}
  0x11   :  { %s1792_s22 = smov 128   ;;  %s1793_s23 = smov 8  }
  0x12   :  { %22 = dma.hbm_to_vmem [thread:$0]  %s2035_s0, 256, %s17_s13, [#allocation3], %s1792_s22, %s1792_s22, %s1793_s23  }
  0x13   :  { %s1794_s26 = smov [#allocation5]   ;;  %s1741_s30 = scalar_lea.hbm %s2036_s1, 512 }
  0x14   :  { %s28_s27 = sshll.u32 %s1794_s26, 4  ;;  %p1742_p8 = scmp.ne.s32.totalorder %s2036_s1, %s1741_s30  ;;  %s29_s27 = int_to_ptr.vmem [resolvable:$true] %s28_s27 }
  0x15   :  { %p1745_p9 = scmp.lt.u32.totalorder %s1741_s30, %s2036_s1 }
  0x17   :  { %p1747_p10 = pnand %p1745_p9, %p1742_p8 }
  0x19   :  { %1750 = shalt.err (!%p1747_p10)
}
  0x1a   :  { %s1751_s8 = scalar_lea.vmem %s29_s27, 512  ;;  %p1756_p12 = scmp.lt.s32.totalorder %s29_s27, %s29_s27 }
  0x1b   :  { %p1752_p11 = scmp.ne.s32.totalorder %s29_s27, %s1751_s8  ;;  %p1757_p13 = scmp.lt.s32.totalorder %s1751_s8, %s1751_s8 }
  0x1d   :  { %p1758_p0 = por %p1757_p13, %p1756_p12 }
  0x1f   :  { %p1759_p1 = pnand %p1758_p0, %p1752_p11 }
  0x21   :  { %1762 = shalt.err (!%p1759_p1)
}
  0x22   :  { %34 = dma.hbm_to_vmem [thread:$0]  %s2036_s1, 512, %s29_s27, [#allocation6], %s1792_s22, %s1792_s22, %s1793_s23  }
  0x23   :  { %1785 = dma.done.wait [#allocation3], 256  }
  0x24   :  { %1786 = vsyncadd [#allocation3], 4294967040 }
  0x25   :  { %1787 = dma.done.wait [#allocation6], 512  }
  0x26   :  { %1788 = vsyncadd [#allocation6], 4294966784  ;;  %vm56_vm0 = vcmask 261120   ;;  %v45_v0 = vld [vmem:[#allocation5] sm:$0xff]  ;;  %v46_v1 = vld [vmem:[#allocation5 + $0x8] sm:$0xff]  ;;  %v1795_v13 = vmov 0.0  }
  0x27   :  { %v47_v2 = vld [vmem:[#allocation5 + $0x10] sm:$0xff]  ;;  %v1665_v3 = vpack.c.bf16 %v46_v1, %v45_v0  ;;  %v48_v4 = vld [vmem:[#allocation5 + $0x18] sm:$0xff]  ;;  %1585 = vmatprep.subr.mxu1 %v1795_v13  ;;  %s1796_s11 = smov 112   ;;  %s1797_s12 = smov 120   ;;  %vm1798_vm1 = vmmov 0   ;;  %vm154_vm2 = vcmask 64512  }
  0x28   :  { %v43_v5 = vld [vmem:[#allocation2] sm:$0xff]  ;;  %v1669_v6 = vpack.c.bf16 %v48_v4, %v47_v2  ;;  %v44_v7 = vld [vmem:[#allocation2 + $0x8] sm:$0xff]  ;;  %1587 = vmatprep.mubr.msk.f32.mxu1 %vm1798_vm1, %v1795_v13  ;;  %s1800_s13 = smov 96   ;;  %s1801_s14 = smov 64   ;;  %vm1483_vm3 = vcmask 130048   ;;  %vm1486_vm4 = vcmask 195584  }
  0x29   :  { %1582 = vmatprep.mubr.msk.f32.mxu0 %vm56_vm0, %v43_v5  ;;  %1666 = vmatprep.subr.bf16.mxu0 %v1665_v3  ;;  %v1509_v8 = vld [vmem:[%s2037_s2] ss:$0 sm:$0xff]  ;;  %s1799_s2 = smov 104   ;;  %s1802_s15 = smov 16  }
  0x2a   :  { %1668 = vmatpush3.bf16.msra.mxu0 %v1665_v3  ;;  %s1803_s16 = smov 24   ;;  %s1804_s17 = smov [#allocation7]  }
  0x2b   :  { %1670 = vmatprep.subr.bf16.mxu0 %v1669_v6  ;;  %s1496_s18 = sshll.u32 %s1804_s17, 4  ;;  %s1497_s18 = int_to_ptr.vmem [resolvable:$true] %s1496_s18 }
  0x2c   :  { %s1763_s19 = scalar_lea.vmem %s1497_s18, 256  ;;  %p1768_p3 = scmp.lt.s32.totalorder %s1497_s18, %s1497_s18 }
  0x2d   :  { %p1764_p2 = scmp.ne.s32.totalorder %s1497_s18, %s1763_s19  ;;  %p1769_p4 = scmp.lt.s32.totalorder %s1763_s19, %s1763_s19 }
  0x2e   :  { %1672 = vmatpush3.bf16.msra.mxu0 %v1669_v6 }
  0x2f   :  { %1595 = vmatprep.subr.mxu0 %v1795_v13  ;;  %p1770_p5 = por %p1769_p4, %p1768_p3 }
  0x31   :  { %1583 = vmatmul.mubr.msk.f32.vlgmr.msra.gmra.mrb[0].mxu0 %vm56_vm0, %v44_v7  ;;  %p1771_p6 = pnand %p1770_p5, %p1764_p2 }
  0x32   :  { %1597 = vmatprep.mubr.msk.f32.mxu0 %vm1798_vm1, %v1795_v13 }
 0x104   :  { %v1584_v9 = vpop.f32.mrb[0].mxu0 }
 0x105   :  { %v1860_v10 = vadd.f32 %v1584_v9, %v1509_v8  ;;  %v129_v11 = vpop.f32.mrb[1].mxu0 }
 0x106   :  { %v1862_v12 = vadd.f32 %v1509_v8, %v129_v11 }
 0x107   :  { %146 = vrot.lane.b32.xlu1 %v1860_v10, %s1796_s11 }
 0x108   :  { %140 = vrot.lane.b32.xlu0 %v1862_v12, %s1797_s12 }
 0x10b   :  { %144 = vrot.lane.b32.xlu1 %v1862_v12, %s1796_s11 }
 0x10c   :  { %142 = vrot.lane.b32.xlu0 %v1860_v10, %s1797_s12 }
 0x10f   :  { %150 = vrot.lane.b32.xlu1 %v1860_v10, %s1799_s2 }
 0x110   :  { %148 = vrot.lane.b32.xlu0 %v1862_v12, %s1799_s2 }
 0x113   :  { %229 = vrot.lane.b32.xlu1 %v1860_v10, %s1800_s13 }
 0x114   :  { %152 = vrot.lane.b32.xlu0 %v1862_v12, %s1800_s13 }
 0x179   :  { %v1878_v14 = vpop.permute.xlu1 %146 }
 0x17a   :  { %v1880_v15 = vpop.permute.xlu0 %140 }
 0x17b   :  { %305 = vrot.lane.b32.xlu0 %v1880_v15, %s1800_s13 }
 0x17d   :  { %v1883_v16 = vpop.permute.xlu1 %144 }
 0x17e   :  { %v1885_v17 = vpop.permute.xlu0 %142 }
 0x17f   :  { %457 = vrot.lane.b32.xlu0 %v1883_v16, %s1800_s13  ;;  %381 = vrot.lane.b32.xlu1 %v1885_v17, %s1800_s13 }
 0x181   :  { %v1893_v19 = vpop.permute.xlu1 %150 }
 0x182   :  { %v1889_v18 = vpop.permute.xlu0 %148 }
 0x183   :  { %533 = vrot.lane.b32.xlu1 %v1878_v14, %s1800_s13  ;;  %609 = vrot.lane.b32.xlu0 %v1889_v18, %s1800_s13 }
 0x185   :  { %v230_v21 = vpop.permute.xlu1 %229 }
 0x186   :  { %v153_v20 = vpop.permute.xlu0 %152 }
 0x187   :  { %685 = vrot.lane.b32.xlu1 %v1893_v19, %s1800_s13  ;;  %1586 = vmatpush3.xpose.msk.msra.mxu1 %vm154_vm2, %v153_v20 }
 0x188   :  { %1590 = vmatprep.subr.mxu1 %v1795_v13 }
 0x18a   :  { %1588 = vmatmul.mubr.msk.f32.vlgmr.msra.gmra.mrb[0].mxu1 %vm154_vm2, %v1862_v12 }
 0x18b   :  { %1591 = vmatpush3.xpose.msk.msra.mxu1 %vm154_vm2, %v230_v21  ;;  %1592 = vmatprep.mubr.msk.f32.mxu1 %vm1798_vm1, %v1795_v13 }
 0x18c   :  { %1600 = vmatprep.subr.mxu1 %v1795_v13 }
 0x18e   :  { %1593 = vmatmul.mubr.msk.f32.vlgmr.msra.gmra.mrb[2].mxu1 %vm154_vm2, %v1860_v10 }
 0x18f   :  { %1602 = vmatprep.mubr.msk.f32.mxu1 %vm1798_vm1, %v1795_v13 }
 0x1ed   :  { %v306_v22 = vpop.permute.xlu0 %305 }
 0x1ee   :  { %1596 = vmatpush3.xpose.msk.msra.mxu0 %vm154_vm2, %v306_v22 }
 0x1ef   :  { %1605 = vmatprep.subr.mxu0 %v1795_v13 }
 0x1f1   :  { %v382_v23 = vpop.permute.xlu1 %381  ;;  %1598 = vmatmul.mubr.msk.f32.vlgmr.msra.gmra.mrb[2].mxu0 %vm154_vm2, %v1880_v15  ;;  %v458_v24 = vpop.permute.xlu0 %457 }
 0x1f2   :  { %1601 = vmatpush3.xpose.msk.msra.mxu1 %vm154_vm2, %v382_v23  ;;  %1606 = vmatpush3.xpose.msk.msra.mxu0 %vm154_vm2, %v458_v24 }
 0x1f3   :  { %1607 = vmatprep.mubr.msk.f32.mxu0 %vm1798_vm1, %v1795_v13  ;;  %1610 = vmatprep.subr.mxu1 %v1795_v13 }
 0x1f4   :  { %1615 = vmatprep.subr.mxu0 %v1795_v13 }
 0x1f5   :  { %v534_v25 = vpop.permute.xlu1 %533  ;;  %1603 = vmatmul.mubr.msk.f32.vlgmr.msra.gmra.mrb[4].mxu1 %vm154_vm2, %v1885_v17  ;;  %1608 = vmatmul.mubr.msk.f32.vlgmr.msra.gmra.mrb[4].mxu0 %vm154_vm2, %v1883_v16  ;;  %v610_v26 = vpop.permute.xlu0 %609 }
 0x1f6   :  { %1611 = vmatpush3.xpose.msk.msra.mxu1 %vm154_vm2, %v534_v25  ;;  %1616 = vmatpush3.xpose.msk.msra.mxu0 %vm154_vm2, %v610_v26 }
 0x1f7   :  { %1612 = vmatprep.mubr.msk.f32.mxu1 %vm1798_vm1, %v1795_v13  ;;  %1617 = vmatprep.mubr.msk.f32.mxu0 %vm1798_vm1, %v1795_v13 }
 0x1f8   :  { %1620 = vmatprep.subr.mxu1 %v1795_v13  ;;  %1625 = vmatprep.subr.mxu0 %v1795_v13 }
 0x1f9   :  { %v686_v27 = vpop.permute.xlu1 %685  ;;  %1613 = vmatmul.mubr.msk.f32.vlgmr.msra.gmra.mrb[6].mxu1 %vm154_vm2, %v1878_v14  ;;  %1618 = vmatmul.mubr.msk.f32.vlgmr.msra.gmra.mrb[6].mxu0 %vm154_vm2, %v1889_v18 }
 0x1fa   :  { %1621 = vmatpush3.xpose.msk.msra.mxu1 %vm154_vm2, %v686_v27  ;;  %1622 = vmatprep.mubr.msk.f32.mxu1 %vm1798_vm1, %v1795_v13 }
 0x1fb   :  { %1630 = vmatprep.subr.mxu1 %v1795_v13  ;;  %1627 = vmatprep.mubr.msk.f32.mxu0 %vm1798_vm1, %v1795_v13 }
 0x1fd   :  { %1623 = vmatmul.mubr.msk.f32.vlgmr.msra.gmra.mrb[8].mxu1 %vm154_vm2, %v1893_v19 }
 0x1fe   :  { %1632 = vmatprep.mubr.msk.f32.mxu1 %vm1798_vm1, %v1795_v13 }
 0x25d   :  { %v225_v28 = vpop.f32.mrb[0].mxu1 }
 0x25e   :  { %v1589_v29 = vpop.f32.mrb[1].mxu1  ;;  %v761_v30 = vsel %vm154_vm2, %v225_v28, -inf }
 0x25f   :  { %762 = vmax.xlane.f32.xlu0 %v761_v30 }
 0x261   :  { %v301_v31 = vpop.f32.mrb[2].mxu1 }
 0x262   :  { %v1594_v32 = vpop.f32.mrb[3].mxu1  ;;  %v764_v33 = vsel %vm154_vm2, %v301_v31, -inf }
 0x263   :  { %765 = vmax.xlane.f32.xlu1 %v764_v33 }
 0x2c4   :  { %v377_v34 = vpop.f32.mrb[2].mxu0 }
 0x2c5   :  { %v1599_v35 = vpop.f32.mrb[3].mxu0  ;;  %v767_v46 = vsel %vm154_vm2, %v377_v34, -inf }
 0x2c8   :  { %v453_v36 = vpop.f32.mrb[4].mxu1  ;;  %v529_v37 = vpop.f32.mrb[4].mxu0 }
 0x2c9   :  { %v1604_v38 = vpop.f32.mrb[5].mxu1  ;;  %v1609_v39 = vpop.f32.mrb[5].mxu0  ;;  %v770_v40 = vsel %vm154_vm2, %v453_v36, -inf  ;;  %v773_v41 = vsel %vm154_vm2, %v529_v37, -inf }
 0x2ca   :  { %771 = vmax.xlane.f32.xlu0 %v770_v40  ;;  %774 = vmax.xlane.f32.xlu1 %v773_v41 }
 0x2cc   :  { %v605_v42 = vpop.f32.mrb[6].mxu1  ;;  %v681_v43 = vpop.f32.mrb[6].mxu0 }
 0x2cd   :  { %v1614_v44 = vpop.f32.mrb[7].mxu1  ;;  %v1619_v45 = vpop.f32.mrb[7].mxu0  ;;  %v779_v47 = vsel %vm154_vm2, %v681_v43, -inf  ;;  %v776_v50 = vsel %vm154_vm2, %v605_v42, -inf }
 0x2ce   :  { %768 = vmax.xlane.f32.xlu0 %v767_v46  ;;  %780 = vmax.xlane.f32.xlu1 %v779_v47 }
 0x2d0   :  { %v757_v48 = vpop.f32.mrb[8].mxu1 }
 0x2d1   :  { %v1624_v49 = vpop.f32.mrb[9].mxu1  ;;  %v782_v51 = vsel %vm154_vm2, %v757_v48, -inf }
 0x2d2   :  { %777 = vmax.xlane.f32.xlu0 %v776_v50 }
 0x2d6   :  { %783 = vmax.xlane.f32.xlu0 %v782_v51 }
 0x2df   :  { %849 = vrot.lane.b32.xlu1 %v1862_v12, %s1801_s14 }
 0x2e3   :  { %1001 = vrot.lane.b32.xlu1 %v1880_v15, %s1801_s14 }
 0x2e7   :  { %1077 = vrot.lane.b32.xlu1 %v1885_v17, %s1801_s14 }
 0x2eb   :  { %1229 = vrot.lane.b32.xlu1 %v1878_v14, %s1801_s14 }
 0x2ec   :  { %925 = vrot.lane.b32.xlu0 %v1860_v10, %s1801_s14  ;;  %v763_v52 = vpop.xlane.xlu0 %762 }
 0x2ed   :  { %v785_v54 = vsub.f32 %v225_v28, %v763_v52 }
 0x2ef   :  { %v793_v56 = vmul.f32 1.442695, %v785_v54 }
 0x2f0   :  { %1153 = vrot.lane.b32.xlu0 %v1883_v16, %s1801_s14  ;;  %v766_v53 = vpop.xlane.xlu1 %765 }
 0x2f1   :  { %v786_v55 = vsub.f32 %v301_v31, %v766_v53  ;;  %1687 = vpow2.f32 %v793_v56 }
 0x2f3   :  { %v795_v57 = vmul.f32 1.442695, %v786_v55 }
 0x2f5   :  { %1689 = vpow2.f32 %v795_v57 }
 0x2fb   :  { %v1964_v58 = vpop.eup %1687 }
 0x2fc   :  { %v809_v61 = vsel %vm154_vm2, %v1964_v58, 0.0 }
 0x2ff   :  { %v1966_v59 = vpop.eup %1689 }
 0x300   :  { %v812_v60 = vsel %vm154_vm2, %v1966_v59, 0.0 }
 0x30f   :  { %813 = vadd.xlane.f32.xlu0 %v812_v60  ;;  %810 = vadd.xlane.f32.xlu1 %v809_v61 }
 0x357   :  { %v775_v62 = vpop.xlane.xlu1 %774  ;;  %v772_v63 = vpop.xlane.xlu0 %771 }
 0x358   :  { %v788_v0 = vsub.f32 %v453_v36, %v772_v63  ;;  %v789_v2 = vsub.f32 %v529_v37, %v775_v62 }
 0x35a   :  { %v799_v1 = vmul.f32 1.442695, %v788_v0  ;;  %v801_v7 = vmul.f32 1.442695, %v789_v2 }
 0x35b   :  { %v781_v3 = vpop.xlane.xlu1 %780  ;;  %v769_v4 = vpop.xlane.xlu0 %768 }
 0x35c   :  { %v787_v5 = vsub.f32 %v377_v34, %v769_v4  ;;  %1691 = vpow2.f32 %v799_v1  ;;  %v791_v8 = vsub.f32 %v681_v43, %v781_v3 }
 0x35e   :  { %v797_v6 = vmul.f32 1.442695, %v787_v5  ;;  %v805_v14 = vmul.f32 1.442695, %v791_v8 }
 0x35f   :  { %v850_v9 = vpop.permute.xlu1 %849  ;;  %v778_v10 = vpop.xlane.xlu0 %777 }
 0x360   :  { %v790_v11 = vsub.f32 %v605_v42, %v778_v10  ;;  %1626 = vmatpush3.msra.mxu0 %v850_v9  ;;  %1693 = vpow2.f32 %v797_v6 }
 0x361   :  { %1635 = vmatprep.subr.mxu0 %v1795_v13  ;;  %1695 = vpow2.f32 %v801_v7 }
 0x362   :  { %v803_v12 = vmul.f32 1.442695, %v790_v11 }
 0x363   :  { %v784_v15 = vpop.xlane.xlu0 %783  ;;  %v1002_v33 = vpop.permute.xlu1 %1001 }
 0x364   :  { %1697 = vpow2.f32 %v803_v12  ;;  %v792_v16 = vsub.f32 %v757_v48, %v784_v15 }
 0x365   :  { %1699 = vpow2.f32 %v805_v14 }
 0x366   :  { %v807_v17 = vmul.f32 1.442695, %v792_v16  ;;  %v1692_v20 = vpop.eup %1691 }
 0x367   :  { %v926_v21 = vpop.permute.xlu0 %925  ;;  %v818_v22 = vsel %vm154_vm2, %v1692_v20, 0.0  ;;  %v1078_v34 = vpop.permute.xlu1 %1077 }
 0x368   :  { %1701 = vpow2.f32 %v807_v17  ;;  %1631 = vmatpush3.msra.mxu1 %v926_v21  ;;  %819 = vadd.xlane.f32.xlu0 %v818_v22 }
 0x369   :  { %1640 = vmatprep.subr.mxu1 %v1795_v13 }
 0x36a   :  { %v1694_v23 = vpop.eup %1693 }
 0x36b   :  { %v815_v24 = vsel %vm154_vm2, %v1694_v23, 0.0  ;;  %v1696_v25 = vpop.eup %1695  ;;  %v1230_v35 = vpop.permute.xlu1 %1229 }
 0x36c   :  { %816 = vadd.xlane.f32.xlu1 %v815_v24  ;;  %v821_v28 = vsel %vm154_vm2, %v1696_v25, 0.0  ;;  %v1154_v36 = vpop.permute.xlu0 %1153 }
 0x36e   :  { %v1698_v26 = vpop.eup %1697 }
 0x36f   :  { %v824_v27 = vsel %vm154_vm2, %v1698_v26, 0.0  ;;  %v1978_v29 = vpop.eup %1699 }
 0x370   :  { %825 = vadd.xlane.f32.xlu0 %v824_v27  ;;  %822 = vadd.xlane.f32.xlu1 %v821_v28  ;;  %v827_v32 = vsel %vm154_vm2, %v1978_v29, 0.0 }
 0x372   :  { %v1702_v30 = vpop.eup %1701 }
 0x373   :  { %v830_v31 = vsel %vm154_vm2, %v1702_v30, 0.0 }
 0x374   :  { %831 = vadd.xlane.f32.xlu0 %v830_v31  ;;  %828 = vadd.xlane.f32.xlu1 %v827_v32 }
 0x385   :  { %1381 = vrot.lane.b32.xlu1 %v1893_v19, %s1801_s14 }
 0x38a   :  { %1305 = vrot.lane.b32.xlu0 %v1889_v18, %s1801_s14 }
 0x39c   :  { %v811_v37 = vpop.xlane.xlu1 %810  ;;  %v814_v38 = vpop.xlane.xlu0 %813 }
 0x39d   :  { %1703 = vrcp.f32 %v811_v37 }
 0x39e   :  { %1705 = vrcp.f32 %v814_v38 }
 0x3a7   :  { %v1704_v39 = vpop.eup %1703 }
 0x3a8   :  { %v1706_v40 = vpop.eup %1705  ;;  %v841_v41 = vmul.f32 %v1704_v39, %v1964_v58 }
 0x3a9   :  { %v842_v42 = vmul.f32 %v1706_v40, %v1966_v59 }
 0x3aa   :  { %1628 = vmatmul.mubr.msk.f32.vlgmr.msra.gmra.mrb[8].mxu0 %vm154_vm2, %v841_v41 }
 0x3ab   :  { %1633 = vmatmul.mubr.msk.f32.vlgmr.msra.gmra.mrb[10].mxu1 %vm154_vm2, %v842_v42  ;;  %1636 = vmatpush3.msra.mxu0 %v1002_v33 }
 0x3ac   :  { %1641 = vmatpush3.msra.mxu1 %v1078_v34  ;;  %1642 = vmatprep.mubr.msk.f32.mxu1 %vm1798_vm1, %v1795_v13 }
 0x3ad   :  { %1650 = vmatprep.subr.mxu1 %v1795_v13  ;;  %1637 = vmatprep.mubr.msk.f32.mxu0 %vm1798_vm1, %v1795_v13 }
 0x3ae   :  { %1645 = vmatprep.subr.mxu0 %v1795_v13 }
 0x3f5   :  { %v820_v18 = vpop.xlane.xlu0 %819 }
 0x3f6   :  { %1707 = vrcp.f32 %v820_v18 }
 0x3f9   :  { %v817_v19 = vpop.xlane.xlu1 %816 }
 0x3fa   :  { %1709 = vrcp.f32 %v817_v19 }
 0x3fd   :  { %v826_v43 = vpop.xlane.xlu0 %825  ;;  %v823_v44 = vpop.xlane.xlu1 %822 }
 0x3fe   :  { %1711 = vrcp.f32 %v826_v43 }
 0x3ff   :  { %1713 = vrcp.f32 %v823_v44 }
 0x400   :  { %v1708_v45 = vpop.eup %1707 }
 0x401   :  { %v832_v46 = vpop.xlane.xlu0 %831  ;;  %v844_v47 = vmul.f32 %v1708_v45, %v1692_v20  ;;  %v829_v48 = vpop.xlane.xlu1 %828 }
 0x402   :  { %1715 = vrcp.f32 %v832_v46 }
 0x403   :  { %1717 = vrcp.f32 %v829_v48  ;;  %1643 = vmatmul.mubr.msk.f32.vlgmr.msra.gmra.mrb[12].mxu1 %vm154_vm2, %v844_v47 }
 0x404   :  { %v1710_v49 = vpop.eup %1709  ;;  %1651 = vmatpush3.msra.mxu1 %v1230_v35  ;;  %1652 = vmatprep.mubr.msk.f32.mxu1 %vm1798_vm1, %v1795_v13 }
 0x405   :  { %v843_v50 = vmul.f32 %v1710_v49, %v1694_v23  ;;  %1660 = vmatprep.subr.mxu1 %v1795_v13  ;;  %v1382_v55 = vpop.permute.xlu1 %1381  ;;  %v1306_v57 = vpop.permute.xlu0 %1305 }
 0x407   :  { %1638 = vmatmul.mubr.msk.f32.vlgmr.msra.gmra.mrb[10].mxu0 %vm154_vm2, %v843_v50 }
 0x408   :  { %v1712_v51 = vpop.eup %1711  ;;  %1646 = vmatpush3.msra.mxu0 %v1154_v36  ;;  %1647 = vmatprep.mubr.msk.f32.mxu0 %vm1798_vm1, %v1795_v13 }
 0x409   :  { %v1714_v52 = vpop.eup %1713  ;;  %v846_v53 = vmul.f32 %v1712_v51, %v1698_v26  ;;  %1655 = vmatprep.subr.mxu0 %v1795_v13 }
 0x40a   :  { %v845_v54 = vmul.f32 %v1714_v52, %v1696_v25 }
 0x40b   :  { %1653 = vmatmul.mubr.msk.f32.vlgmr.msra.gmra.mrb[14].mxu1 %vm154_vm2, %v846_v53 }
 0x40c   :  { %v1716_v56 = vpop.eup %1715  ;;  %1648 = vmatmul.mubr.msk.f32.vlgmr.msra.gmra.mrb[12].mxu0 %vm154_vm2, %v845_v54  ;;  %1661 = vmatpush3.msra.mxu1 %v1382_v55 }
 0x40d   :  { %v1718_v58 = vpop.eup %1717  ;;  %v848_v59 = vmul.f32 %v1716_v56, %v1702_v30  ;;  %1656 = vmatpush3.msra.mxu0 %v1306_v57  ;;  %1657 = vmatprep.mubr.msk.f32.mxu0 %vm1798_vm1, %v1795_v13 }
 0x40e   :  { %v847_v60 = vmul.f32 %v1718_v58, %v1978_v29  ;;  %1662 = vmatprep.mubr.msk.f32.mxu1 %vm1798_vm1, %v1795_v13 }
 0x40f   :  { %1663 = vmatmul.mubr.msk.f32.vlgmr.msra.gmra.mrb[16].mxu1 %vm154_vm2, %v848_v59 }
 0x410   :  { %1658 = vmatmul.mubr.msk.f32.vlgmr.msra.gmra.mrb[14].mxu0 %vm154_vm2, %v847_v60 }
 0x47d   :  { %v921_v61 = vpop.f32.mrb[8].mxu0 }
 0x47e   :  { %v997_v62 = vpop.f32.mrb[10].mxu1  ;;  %v1629_v63 = vpop.f32.mrb[9].mxu0 }
 0x47f   :  { %v1634_v0 = vpop.f32.mrb[11].mxu1 }
 0x4d6   :  { %v1149_v1 = vpop.f32.mrb[12].mxu1 }
 0x4d7   :  { %1461 = vrot.lane.b32.xlu1 %v1149_v1, %s1793_s23  ;;  %v1644_v2 = vpop.f32.mrb[13].mxu1 }
 0x4da   :  { %v1073_v3 = vpop.f32.mrb[10].mxu0 }
 0x4db   :  { %v1639_v4 = vpop.f32.mrb[11].mxu0  ;;  %1459 = vrot.lane.b32.xlu0 %v1073_v3, %s1793_s23 }
 0x4de   :  { %v1301_v5 = vpop.f32.mrb[14].mxu1 }
 0x4df   :  { %v1225_v6 = vpop.f32.mrb[12].mxu0  ;;  %1469 = vrot.lane.b32.xlu1 %v1301_v5, %s1802_s15  ;;  %v1654_v13 = vpop.f32.mrb[15].mxu1 }
 0x4e0   :  { %1467 = vrot.lane.b32.xlu0 %v1225_v6, %s1802_s15  ;;  %v1649_v7 = vpop.f32.mrb[13].mxu0 }
 0x4e2   :  { %v1453_v8 = vpop.f32.mrb[16].mxu1 }
 0x4e3   :  { %v1377_v9 = vpop.f32.mrb[14].mxu0  ;;  %1477 = vrot.lane.b32.xlu1 %v1453_v8, %s1803_s16  ;;  %v1664_v10 = vpop.f32.mrb[17].mxu1 }
 0x4e4   :  { %1475 = vrot.lane.b32.xlu0 %v1377_v9, %s1803_s16  ;;  %v1659_v11 = vpop.f32.mrb[15].mxu0 }
 0x549   :  { %v1462_v12 = vpop.permute.xlu1 %1461 }
 0x54a   :  { %v1482_v17 = vsel %vm154_vm2, %v997_v62, %v1462_v12 }
 0x54d   :  { %v1460_v14 = vpop.permute.xlu0 %1459 }
 0x54e   :  { %v1481_v20 = vsel %vm154_vm2, %v921_v61, %v1460_v14 }
 0x551   :  { %v1470_v15 = vpop.permute.xlu1 %1469 }
 0x552   :  { %v1468_v16 = vpop.permute.xlu0 %1467  ;;  %v1485_v21 = vsel %vm1483_vm3, %v1482_v17, %v1470_v15 }
 0x553   :  { %v1484_v23 = vsel %vm1483_vm3, %v1481_v20, %v1468_v16 }
 0x555   :  { %v1478_v22 = vpop.permute.xlu1 %1477 }
 0x556   :  { %v1488_v24 = vsel %vm1486_vm4, %v1485_v21, %v1478_v22  ;;  %v1476_v25 = vpop.permute.xlu0 %1475 }
 0x557   :  { %1490 = vst.msk [vmem:[#allocation7 + $0x8] sm:$0xff] %vm56_vm0, %v1488_v24  ;;  %v1487_v26 = vsel %vm1486_vm4, %v1484_v23, %v1476_v25 }
 0x558   :  { %1489 = vst.msk [vmem:[#allocation7] sm:$0xff] %vm56_vm0, %v1487_v26 }
 0x559   :  { %1774 = shalt.err (!%p1771_p6)
}
 0x55a   :  { %s1775_s24 = scalar_lea.hbm %s2038_s3, 256 }
 0x55b   :  { %p1776_p7 = scmp.ne.s32.totalorder %s2038_s3, %s1775_s24  ;;  %p1779_p8 = scmp.lt.u32.totalorder %s1775_s24, %s2038_s3 }
 0x55d   :  { %p1781_p9 = pnand %p1779_p8, %p1776_p7 }
 0x55f   :  { %1784 = shalt.err (!%p1781_p9)
}
 0x560   :  { %1502 = dma.vmem_to_hbm [thread:$0]  %s1497_s18, 256, %s2038_s3, [#allocation4], %s1792_s22, %s1792_s22, %s1793_s23  }
 0x561   :  { %1789 = dma.done.wait [#allocation4], 256  }
 0x562   :  { %1790 = vsyncadd [#allocation4], 4294967040 }
 0x563   :  { %1506 = vsyncpa [#allocation3], 1 }
 0x564   :  { %1507 = vsyncpa [#allocation6], 1 }
 0x565   :  { %1508 = vsyncpa [#allocation4], 1 }

</bundles_post_ra>
